<compile_context>
chip_gen: v7x
topology: tpu7x:2x2x1
jax: 0.10.0
libtpu: 0.0.40
codegen_flags: <defaults>
</compile_context>

<pallas_src>
import jax
import jax.numpy as jnp
from jax.experimental import pallas as pl
from jax.experimental.pallas import tpu as pltpu

BN_EPS = 1e-5

# Conservative budgets so the resident-table path is safe on v7x (64 MiB VMEM,
# 32 MiB default scoped) as well as v5e/v6e: split table (bf16, 2*Vp rows) plus
# the [TB, 2*Vp] one-hot intermediate stay well under ~12 MiB at TB=512.
RESIDENT_TABLE_MAX_BYTES = 8 * 1024 * 1024     # 4 * Vp * E  (== split-bf16 bytes)
ONEHOT_MAX_ROWS = 2048                         # Vp cap (bounds one-hot width)


def _round_up(x, m):
    return ((x + m - 1) // m) * m


def _cdiv(a, b):
    return -(-a // b)


# --------------------------------------------------------------------------- #
# Path A: table resident in VMEM, gather = one-hot x table MXU matmul.
# --------------------------------------------------------------------------- #
def _make_onehot_kernel(TB, Vp, E):
    """One batch tile of TB rows; emb_ref is the [2*Vp, E] bf16 hi/lo split table."""

    def kernel(ids_ref, feats_ref, emb_ref, bnss_ref, out_ref):
        ids = ids_ref[...]                                        # [TB, 1] int32
        # One-hot with TWO ones per row: row k (hi half) and row Vp + k (lo half),
        # so dot(onehot, split_table) == w_hi[k] + w_lo[k] == w[k] exactly (f32 acc).
        iota = jax.lax.broadcasted_iota(jnp.int32, (TB, 2 * Vp), 1)
        onehot = ((iota == ids) | (iota == ids + Vp)).astype(jnp.bfloat16)
        embed = jnp.dot(onehot, emb_ref[...],
                        preferred_element_type=jnp.float32)       # [TB, E] f32 (MXU)

        # BatchNorm folded to a global (scale, shift) pair (computed in wrapper).
        scale = bnss_ref[0:1, :]                                  # [1, 3]
        shift = bnss_ref[1:2, :]                                  # [1, 3]
        other = feats_ref[...] * scale + shift                    # [TB, 3]

        out_ref[...] = jnp.concatenate([embed, other], axis=1)    # [TB, E + 3]

    return kernel


# --------------------------------------------------------------------------- #
# Path B: large table stays in HBM; per-row DMA gather straight into the output
# block, one shared semaphore, one coalesced wait per full tile.
# --------------------------------------------------------------------------- #
def _make_dma_gather_kernel(TB, E, B_total, issue_unroll):
    N = E + 3

    def kernel(ids_ref, feats_ref, emb_hbm, bnss_ref, out_ref, sem):
        base = pl.program_id(0) * TB
        live = jnp.minimum(TB, B_total - base)     # non-padded rows in this tile

        # ---- issue: one guarded row DMA per live row, directly into out[:, 0:E].
        # All copies share ONE DMA semaphore; all SMEM id reads happen before any
        # .wait() (keeps sst->sld forwarding intact).  Partial unroll so the LLO
        # scheduler can overlap descriptor issues.
        @pl.loop(0, TB // issue_unroll)
        def _issue(c):
            for u in range(issue_unroll):
                r = c * issue_unroll + u
                @pl.when(r < live)
                def _():
                    row = ids_ref[base + r]        # pre-clamped int32 id (SMEM)
                    pltpu.make_async_copy(
                        emb_hbm.at[pl.ds(row, 1), :],          # [1, E] row in HBM
                        out_ref.at[pl.ds(r, 1), 0:E],          # straight into output
                        sem,
                    ).start()

        # ---- only VPU work sits between issue and wait -> hides DMA latency.
        scale = bnss_ref[0:1, :]
        shift = bnss_ref[1:2, :]
        out_ref[:, E:N] = feats_ref[...] * scale + shift

        # ---- one coalesced wait for a full tile (refs used for byte count only);
        # per-row waits only on the single ragged last tile.
        @pl.when(live == TB)
        def _wait_full():
            pltpu.make_async_copy(
                out_ref.at[:, 0:E], out_ref.at[:, 0:E], sem,
            ).wait()

        @pl.when(live < TB)
        def _wait_ragged():
            @pl.loop(0, TB)
            def _(r):
                @pl.when(r < live)
                def _():
                    pltpu.make_async_copy(
                        out_ref.at[pl.ds(r, 1), 0:E],
                        out_ref.at[pl.ds(r, 1), 0:E],
                        sem,
                    ).wait()

    return kernel


# --------------------------------------------------------------------------- #
# Wrapper
# --------------------------------------------------------------------------- #
def content_embedding_forward(x, emb_weight, bn_gamma, bn_beta, num_categories):
    """x: [B, 4] f32 (col 0 = category id as float, cols 1:4 = features).
    emb_weight: [num_categories + 1, E] f32.  bn_gamma / bn_beta: [1, 3] f32.
    Returns [B, E + 3] f32, matching the PyTorch forward (training-mode BN stats)."""
    B = x.shape[0]
    V, E = emb_weight.shape
    assert V == num_categories + 1
    N_out = E + 3

    ids = jnp.clip(x[:, 0].astype(jnp.int32), 0, num_categories)       # [B]
    feats = x[:, 1:4].astype(jnp.float32)                              # [B, 3]

    # Training-mode BatchNorm1d(3) over the WHOLE batch, folded into one fused
    # (scale, shift) so in-kernel batch tiling cannot change the statistics.
    # B == 1: PyTorch skips BatchNorm entirely -> identity scale/shift.
    if B > 1:
        mean = jnp.mean(feats, axis=0, keepdims=True)
        var = jnp.mean((feats - mean) ** 2, axis=0, keepdims=True)     # biased var
        scale = bn_gamma / jnp.sqrt(var + BN_EPS)
        shift = bn_beta - mean * scale
    else:
        scale = jnp.ones((1, 3), jnp.float32)
        shift = jnp.zeros((1, 3), jnp.float32)
    bn_ss = jnp.concatenate([scale, shift], axis=0).astype(jnp.float32)  # [2, 3]

    # Batch tiling: big tiles (cap 512), ~ceil(B/2) rows each so the grid has
    # >= 2 tiles whenever B allows it (keeps both v7x TensorCores busy).
    TB = min(512, _round_up(max(_cdiv(B, 2), 1), 8))
    B_pad = _round_up(B, TB)
    grid = B_pad // TB
    pad_rows = B_pad - B
    if pad_rows:
        ids = jnp.pad(ids, (0, pad_rows))                    # padded ids -> 0 (valid row)
        feats = jnp.pad(feats, ((0, pad_rows), (0, 0)))

    Vp = _round_up(V, 128)                                   # MXU-tile aligned row count
    use_resident = (Vp <= ONEHOT_MAX_ROWS) and (4 * Vp * E <= RESIDENT_TABLE_MAX_BYTES)

    if use_resident:
        # ---- Path A: VMEM-resident table, one-hot MXU gather -------------------
        # Exact bf16 hi/lo split: hi is exactly representable in bf16, lo carries
        # the residual, so hi + lo reconstructs the f32 weight to ~1e-6 regardless
        # of MXU operand precision; bf16 rows cost the same bytes as the f32 table.
        w_hi = emb_weight.astype(jnp.bfloat16)
        w_lo = (emb_weight - w_hi.astype(jnp.float32)).astype(jnp.bfloat16)
        emb_split = jnp.zeros((2 * Vp, E), jnp.bfloat16)
        emb_split = emb_split.at[:V].set(w_hi).at[Vp:Vp + V].set(w_lo)
        ids2d = ids.reshape(B_pad, 1)

        out = pl.pallas_call(
            _make_onehot_kernel(TB, Vp, E),
            out_shape=jax.ShapeDtypeStruct((B_pad, N_out), jnp.float32),
            grid_spec=pltpu.PrefetchScalarGridSpec(
                num_scalar_prefetch=0,
                grid=(grid,),
                in_specs=[
                    pl.BlockSpec((TB, 1), lambda i: (i, 0)),        # ids (VMEM)
                    pl.BlockSpec((TB, 3), lambda i: (i, 0)),        # feats
                    pl.BlockSpec((2 * Vp, E), lambda i: (0, 0)),    # resident split table
                    pl.BlockSpec((2, 3), lambda i: (0, 0)),         # fused BN scale/shift
                ],
                out_specs=pl.BlockSpec((TB, N_out), lambda i: (i, 0)),
            ),
            compiler_params=pltpu.CompilerParams(
                dimension_semantics=("parallel",),
            ),
        )(ids2d, feats, emb_split, bn_ss)
    else:
        # ---- Path B: table stays in HBM, improved per-row DMA gather -----------
        # TODO(synk): for very large B, block ids per tile instead of
        # scalar-prefetching the whole array (1D SMEM pads to next_pow2(4*B_pad)).
        out = pl.pallas_call(
            _make_dma_gather_kernel(TB, E, B, issue_unroll=8),
            out_shape=jax.ShapeDtypeStruct((B_pad, N_out), jnp.float32),
            grid_spec=pltpu.PrefetchScalarGridSpec(
                num_scalar_prefetch=1,                              # ids -> SMEM
                grid=(grid,),
                in_specs=[
                    pl.BlockSpec((TB, 3), lambda i, ids_ref: (i, 0)),    # feats
                    pl.BlockSpec(memory_space=pl.ANY),                   # emb table (HBM)
                    pl.BlockSpec((2, 3), lambda i, ids_ref: (0, 0)),     # BN scale/shift
                ],
                out_specs=pl.BlockSpec((TB, N_out), lambda i, ids_ref: (i, 0)),
                scratch_shapes=[pltpu.SemaphoreType.DMA(())],            # ONE shared sem
            ),
            compiler_params=pltpu.CompilerParams(
                dimension_semantics=("parallel",),
            ),
        )(ids, feats, emb_weight, bn_ss)

    return out if pad_rows == 0 else out[:B]


# --------------------------------------------------------------------------- #
# Pure-JAX reference (mirrors the PyTorch forward)
# --------------------------------------------------------------------------- #
def _reference_forward(x, emb_weight, bn_gamma, bn_beta, num_categories):
    ids = jnp.clip(x[:, 0].astype(jnp.int32), 0, num_categories)
    cat_embed = emb_weight[ids]
    other = x[:, 1:]
    if x.shape[0] > 1:
        mean = jnp.mean(other, axis=0, keepdims=True)
        var = jnp.mean((other - mean) ** 2, axis=0, keepdims=True)
        other = (other - mean) / jnp.sqrt(var + BN_EPS) * bn_gamma + bn_beta
    return jnp.concatenate([cat_embed, other], axis=1)


if __name__ == "__main__":
    num_categories = 10          # embedding table rows = 11
    embed_dim = 32
    B = 8

    key = jax.random.PRNGKey(0)
    k_ids, k_feat, k_emb = jax.random.split(key, 3)

    # Column 0: category ids (as floats, like the PyTorch module receives them);
    # some ids exceed num_categories to exercise the clamp.
    ids = jax.random.randint(k_ids, (B, 1), minval=0, maxval=num_categories + 3)
    feats = jax.random.normal(k_feat, (B, 3), dtype=jnp.float32)
    x = jnp.concatenate([ids.astype(jnp.float32), feats], axis=1)      # [B, 4]

    # Deterministic xavier-uniform-style init for the embedding table.  Like the
    # PyTorch module, xavier_uniform_ overwrites the padding row, so row 0 is NOT
    # zeroed (padding_idx only affects gradients).
    V = num_categories + 1
    bound = (6.0 / (V + embed_dim)) ** 0.5
    emb_weight = jax.random.uniform(k_emb, (V, embed_dim), jnp.float32,
                                    minval=-bound, maxval=bound)

    # BatchNorm1d(3) default affine params.
    bn_gamma = jnp.ones((1, 3), dtype=jnp.float32)
    bn_beta = jnp.zeros((1, 3), dtype=jnp.float32)

    out = content_embedding_forward(x, emb_weight, bn_gamma, bn_beta, num_categories)
    out = jax.block_until_ready(out)

    ref = _reference_forward(x, emb_weight, bn_gamma, bn_beta, num_categories)
    assert out.shape == (B, embed_dim + 3), out.shape
    assert jnp.allclose(out, ref, atol=1e-5, rtol=1e-5), \
        float(jnp.max(jnp.abs(out - ref)))

    print("KERNEL_OK")
</pallas_src>

<mosaic_0001>
module attributes {stable_mosaic.version = 11 : i64} {
  func.func @kernel(%arg0: i32, %arg1: memref<8x1xi32, #tpu.memory_space<vmem>>, %arg2: memref<8x3xf32, #tpu.memory_space<vmem>>, %arg3: memref<256x32xbf16, #tpu.memory_space<vmem>>, %arg4: memref<2x3xf32, #tpu.memory_space<vmem>>, %arg5: memref<8x35xf32, #tpu.memory_space<vmem>>) attributes {dimension_semantics = [#tpu.dimension_semantics<parallel>], iteration_bounds = array<i64: 1>, scalar_prefetch = 0 : i64, scratch_operands = 0 : i64, tpu.core_type = #tpu.core_type<tc>, window_params = [{transform_indices = @transform_0, window_bounds = array<i64: 8, 1>}, {transform_indices = @transform_1, window_bounds = array<i64: 8, 3>}, {pipeline_mode = #tpu.pipeline_mode<synchronous>, transform_indices = @transform_2, window_bounds = array<i64: 256, 32>}, {pipeline_mode = #tpu.pipeline_mode<synchronous>, transform_indices = @transform_3, window_bounds = array<i64: 2, 3>}, {transform_indices = @transform_4, window_bounds = array<i64: 8, 35>}]} {
    %c0 = arith.constant 0 : index
    %c0_0 = arith.constant 0 : index
    %0 = vector.load %arg1[%c0, %c0_0] : memref<8x1xi32, #tpu.memory_space<vmem>>, vector<8x1xi32>
    %1 = tpu.iota {dimensions = array<i32: 1>} : vector<8x256xi32>
    %2 = vector.broadcast %0 : vector<8x1xi32> to vector<8x256xi32>
    %3 = arith.cmpi eq, %1, %2 : vector<8x256xi32>
    %c128_i32 = arith.constant 128 : i32
    %4 = vector.broadcast %c128_i32 : i32 to vector<8x1xi32>
    %5 = arith.addi %0, %4 : vector<8x1xi32>
    %6 = vector.broadcast %5 : vector<8x1xi32> to vector<8x256xi32>
    %7 = arith.cmpi eq, %1, %6 : vector<8x256xi32>
    %8 = arith.ori %3, %7 : vector<8x256xi1>
    %9 = arith.extui %8 : vector<8x256xi1> to vector<8x256xi32>
    %10 = arith.sitofp %9 : vector<8x256xi32> to vector<8x256xf32>
    %11 = arith.truncf %10 : vector<8x256xf32> to vector<8x256xbf16>
    %c0_1 = arith.constant 0 : index
    %c0_2 = arith.constant 0 : index
    %12 = vector.load %arg3[%c0_1, %c0_2] : memref<256x32xbf16, #tpu.memory_space<vmem>>, vector<256x32xbf16>
    %cst = arith.constant dense<0.000000e+00> : vector<8x32xf32>
    %13 = tpu.matmul %11, %12, %cst {dimension_numbers = #tpu.dot_dimension_numbers<[1], [0], [0], [1], [0, 0, 1, 1], [], []>} : vector<8x256xbf16>, vector<256x32xbf16>, vector<8x32xf32> -> vector<8x32xf32>
    %c0_3 = arith.constant 0 : index
    %c0_4 = arith.constant 0 : index
    %14 = vector.load %arg4[%c0_3, %c0_4] : memref<2x3xf32, #tpu.memory_space<vmem>>, vector<1x3xf32>
    %c1 = arith.constant 1 : index
    %c0_5 = arith.constant 0 : index
    %15 = vector.load %arg4[%c1, %c0_5] : memref<2x3xf32, #tpu.memory_space<vmem>>, vector<1x3xf32>
    %c0_6 = arith.constant 0 : index
    %c0_7 = arith.constant 0 : index
    %16 = vector.load %arg2[%c0_6, %c0_7] : memref<8x3xf32, #tpu.memory_space<vmem>>, vector<8x3xf32>
    %17 = vector.broadcast %14 : vector<1x3xf32> to vector<8x3xf32>
    %18 = arith.mulf %16, %17 : vector<8x3xf32>
    %19 = vector.broadcast %15 : vector<1x3xf32> to vector<8x3xf32>
    %20 = arith.addf %18, %19 : vector<8x3xf32>
    %21 = tpu.concatenate %13, %20 in 1 : vector<8x32xf32>, vector<8x3xf32> -> vector<8x35xf32>
    %c0_8 = arith.constant 0 : index
    %c0_9 = arith.constant 0 : index
    %22 = vector.load %arg5[%c0_8, %c0_9] : memref<8x35xf32, #tpu.memory_space<vmem>>, vector<8x35xf32>
    tpu.vector_store %arg5[%c0_8, %c0_9], %21 {strides = array<i32>} : memref<8x35xf32, #tpu.memory_space<vmem>>, vector<8x35xf32>,
    return
  }
  func.func @transform_0(%arg0: i32) -> (i32, i32) {
    %c0_i32 = arith.constant 0 : i32
    %c0_i32_0 = arith.constant 0 : i32
    return %arg0, %c0_i32 : i32, i32
  }
  func.func @transform_1(%arg0: i32) -> (i32, i32) {
    %c0_i32 = arith.constant 0 : i32
    %c0_i32_0 = arith.constant 0 : i32
    return %arg0, %c0_i32 : i32, i32
  }
  func.func @transform_2(%arg0: i32) -> (i32, i32) {
    %c0_i32 = arith.constant 0 : i32
    %c0_i32_0 = arith.constant 0 : i32
    %c0_i32_1 = arith.constant 0 : i32
    return %c0_i32, %c0_i32_0 : i32, i32
  }
  func.func @transform_3(%arg0: i32) -> (i32, i32) {
    %c0_i32 = arith.constant 0 : i32
    %c0_i32_0 = arith.constant 0 : i32
    %c0_i32_1 = arith.constant 0 : i32
    return %c0_i32, %c0_i32_0 : i32, i32
  }
  func.func @transform_4(%arg0: i32) -> (i32, i32) {
    %c0_i32 = arith.constant 0 : i32
    %c0_i32_0 = arith.constant 0 : i32
    return %arg0, %c0_i32 : i32, i32
  }
}

</mosaic_0001>

<bundles_post_ra>
// kernel: tpu_custom_call.1
= control target key start
LH: loop header
LB: loop body
LE: loop exit
PB: predicated region body
PF: predicated region fallthrough
CT: control target
= control target key end

     0   :  { %v336_v1 = vmov 0   ;;  %s437_s0 = inlined_call_operand.vmem [shape: s32[8,1], index: 0, kind: input, shape index: {}]   ;;  %s438_s1 = inlined_call_operand.vmem [shape: f32[8,3], index: 1, kind: input, shape index: {}]   ;;  %s439_s2 = inlined_call_operand.vmem [shape: bf16[256,32], index: 2, kind: input, shape index: {}]   ;;  %s440_s3 = inlined_call_operand.vmem [shape: f32[2,3], index: 3, kind: input, shape index: {}]   ;;  %s441_s4 = inlined_call_operand.hbm [shape: f32[8,35], index: 4, kind: output, shape index: {}]  }
   0x1   :  { %v19_v0 = vld [vmem:[%s437_s0] sm:$0xff]  ;;  %295 = vset.pattern.permute.xlu0 %v336_v1  ;;  %v298_v5 = vld [vmem:[%s439_s2 + $0x48] sm:$0xff]   ;;  %v300_v7 = vld [vmem:[%s439_s2 + $0x50] sm:$0xff]  }
   0x2   :  { %v296_v2 = vld [vmem:[%s439_s2 + $0x40] sm:$0xff]   ;;  %24 = vperm.xlu0 %295, %v19_v0   ;;  %v28_v3 = vadd.s32 128, %v19_v0  ;;  %v299_v6 = vld [vmem:[%s439_s2 + $0x8] sm:$0xff]   ;;  %v301_v8 = vld [vmem:[%s439_s2 + $0x10] sm:$0xff]  }
   0x3   :  { %v297_v4 = vld [vmem:[%s439_s2] sm:$0xff]   ;;  %269 = vmatprep.subr.bf16.mxu0 %v296_v2  ;;  %v302_v9 = vld [vmem:[%s439_s2 + $0x58] sm:$0xff]   ;;  %v306_v15 = vld [vmem:[%s439_s2 + $0x68] sm:$0xff]  }
   0x4   :  { %270 = vmatpush3.bf16.msra.mxu0 %v297_v4  ;;  %v303_v10 = vld [vmem:[%s439_s2 + $0x18] sm:$0xff]   ;;  %v304_v11 = vld [vmem:[%s439_s2 + $0x60] sm:$0xff]  }
   0x5   :  { %271 = vmatprep.subr.bf16.mxu0 %v298_v5  ;;  %v305_v12 = vld [vmem:[%s439_s2 + $0x20] sm:$0xff]  }
   0x6   :  { %30 = vperm.xlu0 %295, %v28_v3   ;;  %v267_v13 = vld [vmem:[%s440_s3] ss:$0 sm:$0xff]  ;;  %v268_v16 = vld [vmem:[%s440_s3 + $0x1] ss:$0 sm:$0xff] }
   0x7   :  { %v212_v14 = vld [vmem:[%s438_s1] sm:$0xff] }
   0x8   :  { %272 = vmatpush3.bf16.msra.mxu0 %v299_v6  ;;  %v217_v17 = vmul.f32 %v267_v13, %v212_v14 }
   0x9   :  { %273 = vmatprep.subr.bf16.mxu0 %v300_v7 }
   0xc   :  { %274 = vmatpush3.bf16.msra.mxu0 %v301_v8 }
   0xd   :  { %275 = vmatprep.subr.bf16.mxu0 %v302_v9 }
  0x10   :  { %276 = vmatpush3.bf16.msra.mxu0 %v303_v10 }
  0x11   :  { %277 = vmatprep.subr.bf16.mxu0 %v304_v11 }
  0x12   :  { %9 = vsyncpa [#allocation3], 0  ;;  %v222_v18 = vadd.f32 %v268_v16, %v217_v17  ;;  %v307_v19 = vld [vmem:[%s439_s2 + $0x28] sm:$0xff]   ;;  %v308_v20 = vld [vmem:[%s439_s2 + $0x70] sm:$0xff]   ;;  %s337_s21 = smov 32   ;;  %v20_v24 = vlaneseq  ;;  %vm227_vm8 = vcmask 261120  }
  0x13   :  { %v309_v21 = vld [vmem:[%s439_s2 + $0x30] sm:$0xff]   ;;  %v310_v22 = vld [vmem:[%s439_s2 + $0x78] sm:$0xff]   ;;  %v338_v29 = vmov 1.0|1.0   ;;  %vm229_vm9 = vcmask 285696  }
  0x14   :  { %278 = vmatpush3.bf16.msra.mxu0 %v305_v12  ;;  %224 = vrot.lane.b32.xlu1 %v222_v18, %s337_s21  ;;  %v311_v23 = vld [vmem:[%s439_s2 + $0x38] sm:$0xff]   ;;  %v21_v25 = vand.u32 127, %v20_v24  ;;  %s339_s2 = smov [#allocation2]  }
  0x15   :  { %279 = vmatprep.subr.bf16.mxu0 %v306_v15  ;;  %s237_s26 = sshll.u32 %s339_s2, 4  ;;  %s238_s26 = int_to_ptr.vmem [resolvable:$true] %s237_s26 }
  0x16   :  { %v22_v27 = vadd.s32 128, %v21_v25  ;;  %s312_s27 = scalar_lea.vmem %s238_s26, 128  ;;  %p317_p1 = scmp.lt.s32.totalorder %s238_s26, %s238_s26 }
  0x17   :  { %p313_p0 = scmp.ne.s32.totalorder %s238_s26, %s312_s27  ;;  %p318_p2 = scmp.lt.s32.totalorder %s312_s27, %s312_s27 }
  0x18   :  { %280 = vmatpush3.bf16.msra.mxu0 %v307_v19 }
  0x19   :  { %281 = vmatprep.subr.bf16.mxu0 %v308_v20  ;;  %p319_p3 = por %p318_p2, %p317_p1 }
  0x1b   :  { %p320_p4 = pnand %p319_p3, %p313_p0 }
  0x1c   :  { %282 = vmatpush3.bf16.msra.mxu0 %v309_v21 }
  0x1d   :  { %283 = vmatprep.subr.bf16.mxu0 %v310_v22 }
  0x20   :  { %284 = vmatpush3.bf16.msra.mxu0 %v311_v23 }
  0x81   :  { %v25_v26 = vpop.permute.xlu0 %24 }
  0x82   :  { %vm26_vm0 = vcmp.eq.s32.totalorder %v21_v25, %v25_v26  ;;  %vm27_vm5 = vcmp.eq.s32.totalorder %v22_v27, %v25_v26 }
  0x85   :  { %v31_v28 = vpop.permute.xlu0 %30 }
  0x86   :  { %vm32_vm1 = vcmp.eq.s32.totalorder %v21_v25, %v31_v28  ;;  %vm33_vm2 = vcmp.eq.s32.totalorder %v22_v27, %v31_v28  ;;  %v225_v32 = vpop.permute.xlu1 %224 }
  0x87   :  { %vm34_vm3 = vmor %vm26_vm0, %vm32_vm1 }
  0x88   :  { %vm265_vm4 = vmpackc.low %vm34_vm3, %vm34_vm3 }
  0x89   :  { %vm35_vm6 = vmor %vm27_vm5, %vm33_vm2 }
  0x8a   :  { %vm263_vm7 = vmpackc.low %vm35_vm6, %vm35_vm6 }
  0x8b   :  { %264 = vmatprep.mubr.msk.bf16.mxu0 %vm263_vm7, %v338_v29 }
  0x8c   :  { %266 = vmatmul.mubr.msk.bf16.vlgmr.msra.gmra.mrb[0].mxu0 %vm265_vm4, %v338_v29 }
 0x15f   :  { %v285_v30 = vpop.f32.mrb[0].mxu0 }
 0x160   :  { %v286_v31 = vpop.f32.mrb[1].mxu0 }
 0x161   :  { %v287_v33 = vadd.f32 %v286_v31, %v285_v30  ;;  %v288_v34 = vpop.f32.mrb[2].mxu0 }
 0x162   :  { %v289_v35 = vpop.f32.mrb[3].mxu0 }
 0x163   :  { %v228_v36 = vsel %vm227_vm8, %v287_v33, %v225_v32 }
 0x164   :  { %230 = vst.msk [vmem:[#allocation2] sm:$0xff] %vm229_vm9, %v228_v36 }
 0x165   :  { %323 = shalt.err (!%p320_p4)
}
 0x166   :  { %s324_s30 = scalar_lea.hbm %s441_s4, 128 }
 0x167   :  { %p325_p5 = scmp.ne.s32.totalorder %s441_s4, %s324_s30  ;;  %p328_p6 = scmp.lt.u32.totalorder %s324_s30, %s441_s4 }
 0x169   :  { %p330_p7 = pnand %p328_p6, %p325_p5 }
 0x16b   :  { %333 = shalt.err (!%p330_p7)
}
 0x16c   :  { %240 = dma.vmem_to_hbm [thread:$0]  %s238_s26, 128, %s441_s4, [#allocation3]  }
 0x16d   :  { %334 = dma.done.wait [#allocation3], 128  }
 0x16e   :  { %335 = vsyncadd [#allocation3], 4294967168 }
 0x16f   :  { %244 = vsyncpa [#allocation3], 1 }

</bundles_post_ra>
